<compile_context>
chip_gen: v5e
topology: v5e:2x2
jax: 0.10.0
libtpu: 0.0.40
codegen_flags: <defaults>
</compile_context>

<pallas_src>
from functools import partial

import numpy as np
import jax
import jax.numpy as jnp
from jax.experimental import pallas as pl
from jax.experimental.pallas import tpu as pltpu

EPS = 1e-5
LANES = 128


# ----------------------------------------------------------------------------- layout

def _round_up(n, m):
    return ((n + m - 1) // m) * m


def _weight_layout(dims):
    """Row layout of the bf16 weight slab (all offsets / sizes are multiples of 16).

    Per block i (a = dims[i], o = dims[i+1]):
      w1 region  (k1 = rnd16(a+1)   rows): rows[:a] = W1, row a     = b1
      w2f region (k2 = rnd16(o+a+1) rows): rows[:o] = W2, rows[o:o+a] = Ws, row o+a = b2+bs
    Final Linear  (kf = rnd16(dims[-1]+1) rows): rows[:dims[-1]] = Wf, row dims[-1] = bf
    The bias rows are driven by constant-1 lanes (see pack_params / kernel).
    """
    blocks = []
    off = 0
    for i in range(len(dims) - 1):
        a, o = dims[i], dims[i + 1]
        # roll-based shortcut fusion + the constant-1 bias lane require a + o <= 127
        assert a + o <= 127, f"dims[{i}]+dims[{i+1}]={a + o} > 127: roll fusion invalid"
        k1 = _round_up(a + 1, 16)
        k2 = _round_up(o + a + 1, 16)
        blocks.append((off, k1, off + k1, k2))
        off += k1 + k2
    kf = _round_up(dims[-1] + 1, 16)
    return blocks, (off, kf), off + kf


# ----------------------------------------------------------------------------- kernel

def _bn_fold(x, gamma, beta, inv_b):
    """nn.BatchNorm1d (training mode, biased variance) folded to one scale/shift per lane.

    Single pass: sum(x) and sum(x*x) are two independent sublane reductions (review item);
    var = E[x^2] - mean^2 can be epsilon-negative from rounding, but EPS (1e-5) dominates any
    such cancellation at these activation magnitudes so rsqrt stays finite.
    Lanes with gamma == 0 map exactly to beta (0 for padding, 1 for the injected bias lanes),
    independent of the lane's input value.
    """
    s1 = jnp.sum(x, axis=0, keepdims=True)
    s2 = jnp.sum(x * x, axis=0, keepdims=True)
    mean = s1 * inv_b
    var = s2 * inv_b - mean * mean
    scale = gamma * jax.lax.rsqrt(var + EPS)
    shift = beta - mean * scale
    return x * scale + shift


def small_resnet_kernel(x_ref, vec_ref, w_ref, out_ref, *, dims):
    """x_ref:  (B, 128) f32 lane-padded input.
    vec_ref: (8*n_blocks, 128) f32 BN gamma/beta rows (with injected constant-1 lanes).
    w_ref:   (rows, 128) bf16 tightly row-packed weights with folded biases."""
    blocks, (f_off, kf), _ = _weight_layout(dims)
    inv_b = 1.0 / x_ref.shape[0]
    x = x_ref[...].astype(jnp.float32)

    for i, (w1_off, k1, w2_off, k2) in enumerate(blocks):
        a, o = dims[i], dims[i + 1]
        vec = vec_ref[8 * i:8 * i + 8, :]
        g1, be1 = vec[0:1, :], vec[1:2, :]      # beta1[a]   == 1 -> constant-1 lane for b1
        g2, be2 = vec[2:3, :], vec[3:4, :]      # beta2[o+a] == 1 -> constant-1 lane for b2+bs
        w1 = w_ref[w1_off:w1_off + k1, :]       # rows[:a]=W1, row a = b1
        w2f = w_ref[w2_off:w2_off + k2, :]      # rows[:o]=W2, rows[o:o+a]=Ws, row o+a = b2+bs

        # main track: bn1 -> relu -> linear1 (bias b1 folded into the matmul via the 1-lane)
        h = jnp.maximum(_bn_fold(x, g1, be1, inv_b), 0.0)
        y1 = jnp.dot(h.astype(jnp.bfloat16)[:, :k1], w1,
                     preferred_element_type=jnp.float32)
        # bn2 -> relu
        h2 = jnp.maximum(_bn_fold(y1, g2, be2, inv_b), 0.0)
        # fused linear2 + shortcut + bias:   [h2 | x | 1] @ [[W2],[Ws],[b2+bs]]
        # (XLU roll places x's `a` live lanes at offset o, disjoint from h2's `o` live lanes
        #  and from the constant-1 lane at o+a)
        fused = h2 + pltpu.roll(x, shift=o, axis=1)
        x = jnp.maximum(jnp.dot(fused.astype(jnp.bfloat16)[:, :k2], w2f,
                                preferred_element_type=jnp.float32), 0.0)

    # final Linear (bias bf folded: the last block emits a constant 1 at lane dims[-1])
    wf = w_ref[f_off:f_off + kf, :]
    y = jnp.dot(x.astype(jnp.bfloat16)[:, :kf], wf, preferred_element_type=jnp.float32)
    out_ref[...] = y.astype(out_ref.dtype)


# ----------------------------------------------------------------------------- host-side packing

def pack_params(params, dims, out_dim):
    """Pack parameters into a small f32 BN slab and one tightly row-packed bf16 weight slab."""
    n_blocks = len(dims) - 1
    blocks_lay, (f_off, kf), total_rows = _weight_layout(dims)
    vec = np.zeros((8 * n_blocks, LANES), np.float32)
    wsl = np.zeros((total_rows, LANES), np.float32)

    for i, blk in enumerate(params["blocks"]):
        g1, be1, w1, b1, g2, be2, w2, b2, ws, bs = (np.asarray(p, np.float32) for p in blk)
        a, o = dims[i], dims[i + 1]
        vb = 8 * i
        vec[vb + 0, :a] = g1.reshape(-1)
        vec[vb + 1, :a] = be1.reshape(-1)
        vec[vb + 1, a] = 1.0                      # constant-1 lane driving folded b1
        vec[vb + 2, :o] = g2.reshape(-1)
        vec[vb + 3, :o] = be2.reshape(-1)
        vec[vb + 3, o + a] = 1.0                  # constant-1 lane driving folded b2+bs

        w1_off, k1, w2_off, k2 = blocks_lay[i]
        wsl[w1_off:w1_off + a, :o] = w1
        wsl[w1_off + a, :o] = b1.reshape(-1)
        wsl[w2_off:w2_off + o, :o] = w2
        wsl[w2_off + o:w2_off + o + a, :o] = ws
        wsl[w2_off + o + a, :o] = (b2 + bs).reshape(-1)
        if i == n_blocks - 1:
            # make the last block emit a constant 1 at lane dims[-1], which drives the final
            # Linear's bias row (wf row dims[-1]) with zero extra in-kernel ops
            wsl[w2_off + o + a, o] = 1.0

        # padded-lane invariants (review correctness concern): everything else stays 0
        assert np.all(vec[vb + 0, a:] == 0.0)
        assert np.all(vec[vb + 1, a + 1:] == 0.0) and vec[vb + 1, a] == 1.0
        assert np.all(vec[vb + 2, o:] == 0.0)
        assert np.all(vec[vb + 3, o:o + a] == 0.0) and np.all(vec[vb + 3, o + a + 1:] == 0.0)

    wf, bf = (np.asarray(p, np.float32) for p in params["final"])
    wsl[f_off:f_off + dims[-1], :out_dim] = wf
    wsl[f_off + dims[-1], :out_dim] = bf.reshape(-1)

    return jnp.asarray(vec), jnp.asarray(wsl, dtype=jnp.bfloat16)


def make_forward(dims, out_dim):
    n_blocks = len(dims) - 1
    _, _, total_rows = _weight_layout(dims)
    kernel = partial(small_resnet_kernel, dims=tuple(dims))

    @jax.jit
    def forward(x, vec_slab, w_slab):
        assert vec_slab.shape == (8 * n_blocks, LANES) and vec_slab.dtype == jnp.float32
        assert w_slab.shape == (total_rows, LANES) and w_slab.dtype == jnp.bfloat16
        B, in_dim = x.shape
        # TODO(synk): at large batch, pass x un-padded (full-array block) and pad in-kernel to
        # avoid this extra XLA pad + output slice; negligible at this batch size.
        x_pad = jnp.zeros((B, LANES), jnp.float32).at[:, :in_dim].set(x.astype(jnp.float32))
        out_pad = pl.pallas_call(
            kernel,
            out_shape=jax.ShapeDtypeStruct((B, LANES), jnp.float32),
            in_specs=[pl.BlockSpec(memory_space=pltpu.MemorySpace.VMEM)] * 3,
            out_specs=pl.BlockSpec(memory_space=pltpu.MemorySpace.VMEM),
        )(x_pad, vec_slab, w_slab)
        return out_pad[:, :out_dim]

    return forward


# ----------------------------------------------------------------------------- params / reference

def _linear_init(key, fan_in, fan_out):
    # PyTorch nn.Linear default: U(-1/sqrt(fan_in), 1/sqrt(fan_in)); stored transposed (in, out).
    kw, kb = jax.random.split(key)
    bound = 1.0 / jnp.sqrt(float(fan_in))
    w = jax.random.uniform(kw, (fan_in, fan_out), jnp.float32, -bound, bound)
    b = jax.random.uniform(kb, (1, fan_out), jnp.float32, -bound, bound)
    return w, b


def init_params(key, dims, out_dim):
    blocks = []
    for i in range(len(dims) - 1):
        a, o = dims[i], dims[i + 1]
        key, k1, k2, k3 = jax.random.split(key, 4)
        g1 = jnp.ones((1, a), jnp.float32)
        be1 = jnp.zeros((1, a), jnp.float32)
        w1, b1 = _linear_init(k1, a, o)
        g2 = jnp.ones((1, o), jnp.float32)
        be2 = jnp.zeros((1, o), jnp.float32)
        w2, b2 = _linear_init(k2, o, o)
        ws, bs = _linear_init(k3, a, o)
        blocks.append([g1, be1, w1, b1, g2, be2, w2, b2, ws, bs])
    key, kf = jax.random.split(key)
    wf, bf = _linear_init(kf, dims[-1], out_dim)
    return {"blocks": blocks, "final": [wf, bf]}


def reference_forward(x, params):
    """Pure-JAX reference matching the PyTorch module (train-mode BN)."""
    def bn(v, g, b):
        mean = jnp.mean(v, axis=0, keepdims=True)
        var = jnp.mean((v - mean) ** 2, axis=0, keepdims=True)
        return (v - mean) * jax.lax.rsqrt(var + EPS) * g + b

    h = x
    for (g1, be1, w1, b1, g2, be2, w2, b2, ws, bs) in params["blocks"]:
        m = jnp.maximum(bn(h, g1, be1), 0.0)
        m = m @ w1 + b1
        m = jnp.maximum(bn(m, g2, be2), 0.0)
        m = m @ w2 + b2
        sc = h @ ws + bs
        h = jnp.maximum(m + sc, 0.0)
    wf, bf = params["final"]
    return h @ wf + bf


def quantize_like_kernel(params):
    """Reference params with everything stored in the bf16 weight slab rounded to bf16
    (BN gamma/beta stay f32, matching the f32 vec slab)."""
    q = lambda p: jnp.asarray(p, jnp.bfloat16).astype(jnp.float32)
    blocks = []
    for (g1, be1, w1, b1, g2, be2, w2, b2, ws, bs) in params["blocks"]:
        blocks.append([g1, be1, q(w1), q(b1), g2, be2, q(w2), q(b2), q(ws), q(bs)])
    wf, bf = params["final"]
    return {"blocks": blocks, "final": [q(wf), q(bf)]}


# ----------------------------------------------------------------------------- main

if __name__ == "__main__":
    key = jax.random.PRNGKey(0)
    k_x, k_p = jax.random.split(key)

    B, in_dim, out_dim = 16, 4, 2
    dims = (in_dim, 64, 32, 16, 8)          # layer1_no .. layer4_no

    x = jax.random.normal(k_x, (B, in_dim), jnp.float32)
    params = init_params(k_p, dims, out_dim)
    vec_slab, w_slab = pack_params(params, dims, out_dim)   # packed once, reused across calls

    forward = make_forward(dims, out_dim)
    out = forward(x, vec_slab, w_slab)
    jax.block_until_ready(out)
    assert out.shape == (B, out_dim)

    # Primary check: same math at matched (bf16) weight precision.  Remaining deltas come from
    # the bf16 activation casts at the dot inputs and the single-pass variance formula; BN +
    # relu decision boundaries can mildly amplify them, hence the tolerance.
    ref_q = reference_forward(x, quantize_like_kernel(params))
    assert jnp.allclose(out, ref_q, atol=3e-2, rtol=3e-2), (out, ref_q)
    # Loose sanity vs. the exact f32 module: adds bf16 weight-quantization drift.
    ref = reference_forward(x, params)
    assert jnp.allclose(out, ref, atol=1.5e-1, rtol=1.5e-1), (out, ref)
    print("KERNEL_OK")
</pallas_src>

<mosaic_0001>
module attributes {stable_mosaic.version = 11 : i64} {
  func.func @small_resnet_kernel(%arg0: memref<16x128xf32, #tpu.memory_space<vmem>>, %arg1: memref<32x128xf32, #tpu.memory_space<vmem>>, %arg2: memref<480x128xbf16, #tpu.memory_space<vmem>>, %arg3: memref<16x128xf32, #tpu.memory_space<vmem>>) attributes {dimension_semantics = [], scalar_prefetch = 0 : i64, scratch_operands = 0 : i64, tpu.core_type = #tpu.core_type<tc>} {
    %c0 = arith.constant 0 : index
    %c0_0 = arith.constant 0 : index
    %0 = vector.load %arg0[%c0, %c0_0] : memref<16x128xf32, #tpu.memory_space<vmem>>, vector<16x128xf32>
    %c0_1 = arith.constant 0 : index
    %c0_2 = arith.constant 0 : index
    %1 = vector.load %arg1[%c0_1, %c0_2] : memref<32x128xf32, #tpu.memory_space<vmem>>, vector<8x128xf32>
    %2 = vector.extract_strided_slice %1 {offsets = [0, 0], sizes = [1, 128], strides = [1, 1]} : vector<8x128xf32> to vector<1x128xf32>
    %3 = vector.extract_strided_slice %1 {offsets = [1, 0], sizes = [1, 128], strides = [1, 1]} : vector<8x128xf32> to vector<1x128xf32>
    %4 = vector.extract_strided_slice %1 {offsets = [2, 0], sizes = [1, 128], strides = [1, 1]} : vector<8x128xf32> to vector<1x128xf32>
    %5 = vector.extract_strided_slice %1 {offsets = [3, 0], sizes = [1, 128], strides = [1, 1]} : vector<8x128xf32> to vector<1x128xf32>
    %c0_3 = arith.constant 0 : index
    %c0_4 = arith.constant 0 : index
    %6 = vector.load %arg2[%c0_3, %c0_4] : memref<480x128xbf16, #tpu.memory_space<vmem>>, vector<16x128xbf16>
    %c16 = arith.constant 16 : index
    %c0_5 = arith.constant 0 : index
    %7 = vector.load %arg2[%c16, %c0_5] : memref<480x128xbf16, #tpu.memory_space<vmem>>, vector<80x128xbf16>
    %cst = arith.constant dense<0.000000e+00> : vector<128xf32>
    %8 = vector.multi_reduction <add>, %0, %cst [0] : vector<16x128xf32> to vector<128xf32>
    %9 = vector.shape_cast %8 : vector<128xf32> to vector<1x128xf32>
    %10 = arith.mulf %0, %0 : vector<16x128xf32>
    %cst_6 = arith.constant dense<0.000000e+00> : vector<128xf32>
    %11 = vector.multi_reduction <add>, %10, %cst_6 [0] : vector<16x128xf32> to vector<128xf32>
    %12 = vector.shape_cast %11 : vector<128xf32> to vector<1x128xf32>
    %cst_7 = arith.constant 6.250000e-02 : f32
    %13 = vector.broadcast %cst_7 : f32 to vector<1x128xf32>
    %14 = arith.mulf %9, %13 : vector<1x128xf32>
    %cst_8 = arith.constant 6.250000e-02 : f32
    %15 = vector.broadcast %cst_8 : f32 to vector<1x128xf32>
    %16 = arith.mulf %12, %15 : vector<1x128xf32>
    %17 = arith.mulf %14, %14 : vector<1x128xf32>
    %18 = arith.subf %16, %17 : vector<1x128xf32>
    %cst_9 = arith.constant 9.99999974E-6 : f32
    %19 = vector.broadcast %cst_9 : f32 to vector<1x128xf32>
    %20 = arith.addf %18, %19 : vector<1x128xf32>
    %21 = math.rsqrt %20 : vector<1x128xf32>
    %22 = arith.mulf %2, %21 : vector<1x128xf32>
    %23 = arith.mulf %14, %22 : vector<1x128xf32>
    %24 = arith.subf %3, %23 : vector<1x128xf32>
    %25 = vector.broadcast %22 : vector<1x128xf32> to vector<16x128xf32>
    %26 = arith.mulf %0, %25 : vector<16x128xf32>
    %27 = vector.broadcast %24 : vector<1x128xf32> to vector<16x128xf32>
    %28 = arith.addf %26, %27 : vector<16x128xf32>
    %cst_10 = arith.constant 0.000000e+00 : f32
    %29 = vector.broadcast %cst_10 : f32 to vector<16x128xf32>
    %30 = arith.maximumf %28, %29 : vector<16x128xf32>
    %31 = arith.truncf %30 : vector<16x128xf32> to vector<16x128xbf16>
    %32 = vector.extract_strided_slice %31 {offsets = [0, 0], sizes = [16, 16], strides = [1, 1]} : vector<16x128xbf16> to vector<16x16xbf16>
    %cst_11 = arith.constant dense<0.000000e+00> : vector<16x128xf32>
    %33 = tpu.matmul %32, %6, %cst_11 {dimension_numbers = #tpu.dot_dimension_numbers<[1], [0], [0], [1], [0, 0, 1, 1], [], []>} : vector<16x16xbf16>, vector<16x128xbf16>, vector<16x128xf32> -> vector<16x128xf32>
    %cst_12 = arith.constant dense<0.000000e+00> : vector<128xf32>
    %34 = vector.multi_reduction <add>, %33, %cst_12 [0] : vector<16x128xf32> to vector<128xf32>
    %35 = vector.shape_cast %34 : vector<128xf32> to vector<1x128xf32>
    %36 = arith.mulf %33, %33 : vector<16x128xf32>
    %cst_13 = arith.constant dense<0.000000e+00> : vector<128xf32>
    %37 = vector.multi_reduction <add>, %36, %cst_13 [0] : vector<16x128xf32> to vector<128xf32>
    %38 = vector.shape_cast %37 : vector<128xf32> to vector<1x128xf32>
    %cst_14 = arith.constant 6.250000e-02 : f32
    %39 = vector.broadcast %cst_14 : f32 to vector<1x128xf32>
    %40 = arith.mulf %35, %39 : vector<1x128xf32>
    %cst_15 = arith.constant 6.250000e-02 : f32
    %41 = vector.broadcast %cst_15 : f32 to vector<1x128xf32>
    %42 = arith.mulf %38, %41 : vector<1x128xf32>
    %43 = arith.mulf %40, %40 : vector<1x128xf32>
    %44 = arith.subf %42, %43 : vector<1x128xf32>
    %cst_16 = arith.constant 9.99999974E-6 : f32
    %45 = vector.broadcast %cst_16 : f32 to vector<1x128xf32>
    %46 = arith.addf %44, %45 : vector<1x128xf32>
    %47 = math.rsqrt %46 : vector<1x128xf32>
    %48 = arith.mulf %4, %47 : vector<1x128xf32>
    %49 = arith.mulf %40, %48 : vector<1x128xf32>
    %50 = arith.subf %5, %49 : vector<1x128xf32>
    %51 = vector.broadcast %48 : vector<1x128xf32> to vector<16x128xf32>
    %52 = arith.mulf %33, %51 : vector<16x128xf32>
    %53 = vector.broadcast %50 : vector<1x128xf32> to vector<16x128xf32>
    %54 = arith.addf %52, %53 : vector<16x128xf32>
    %cst_17 = arith.constant 0.000000e+00 : f32
    %55 = vector.broadcast %cst_17 : f32 to vector<16x128xf32>
    %56 = arith.maximumf %54, %55 : vector<16x128xf32>
    %c64_i32 = arith.constant 64 : i32
    %57 = tpu.dynamic_rotate %0 by %c64_i32 dim 1 : vector<16x128xf32>, i32 -> vector<16x128xf32>
    %58 = arith.addf %56, %57 : vector<16x128xf32>
    %59 = arith.truncf %58 : vector<16x128xf32> to vector<16x128xbf16>
    %60 = vector.extract_strided_slice %59 {offsets = [0, 0], sizes = [16, 80], strides = [1, 1]} : vector<16x128xbf16> to vector<16x80xbf16>
    %cst_18 = arith.constant dense<0.000000e+00> : vector<16x128xf32>
    %61 = tpu.matmul %60, %7, %cst_18 {dimension_numbers = #tpu.dot_dimension_numbers<[1], [0], [0], [1], [0, 0, 1, 1], [], []>} : vector<16x80xbf16>, vector<80x128xbf16>, vector<16x128xf32> -> vector<16x128xf32>
    %cst_19 = arith.constant 0.000000e+00 : f32
    %62 = vector.broadcast %cst_19 : f32 to vector<16x128xf32>
    %63 = arith.maximumf %61, %62 : vector<16x128xf32>
    %c8 = arith.constant 8 : index
    %c0_20 = arith.constant 0 : index
    %64 = vector.load %arg1[%c8, %c0_20] : memref<32x128xf32, #tpu.memory_space<vmem>>, vector<8x128xf32>
    %65 = vector.extract_strided_slice %64 {offsets = [0, 0], sizes = [1, 128], strides = [1, 1]} : vector<8x128xf32> to vector<1x128xf32>
    %66 = vector.extract_strided_slice %64 {offsets = [1, 0], sizes = [1, 128], strides = [1, 1]} : vector<8x128xf32> to vector<1x128xf32>
    %67 = vector.extract_strided_slice %64 {offsets = [2, 0], sizes = [1, 128], strides = [1, 1]} : vector<8x128xf32> to vector<1x128xf32>
    %68 = vector.extract_strided_slice %64 {offsets = [3, 0], sizes = [1, 128], strides = [1, 1]} : vector<8x128xf32> to vector<1x128xf32>
    %c96 = arith.constant 96 : index
    %c0_21 = arith.constant 0 : index
    %69 = vector.load %arg2[%c96, %c0_21] : memref<480x128xbf16, #tpu.memory_space<vmem>>, vector<80x128xbf16>
    %c176 = arith.constant 176 : index
    %c0_22 = arith.constant 0 : index
    %70 = vector.load %arg2[%c176, %c0_22] : memref<480x128xbf16, #tpu.memory_space<vmem>>, vector<112x128xbf16>
    %cst_23 = arith.constant dense<0.000000e+00> : vector<128xf32>
    %71 = vector.multi_reduction <add>, %63, %cst_23 [0] : vector<16x128xf32> to vector<128xf32>
    %72 = vector.shape_cast %71 : vector<128xf32> to vector<1x128xf32>
    %73 = arith.mulf %63, %63 : vector<16x128xf32>
    %cst_24 = arith.constant dense<0.000000e+00> : vector<128xf32>
    %74 = vector.multi_reduction <add>, %73, %cst_24 [0] : vector<16x128xf32> to vector<128xf32>
    %75 = vector.shape_cast %74 : vector<128xf32> to vector<1x128xf32>
    %cst_25 = arith.constant 6.250000e-02 : f32
    %76 = vector.broadcast %cst_25 : f32 to vector<1x128xf32>
    %77 = arith.mulf %72, %76 : vector<1x128xf32>
    %cst_26 = arith.constant 6.250000e-02 : f32
    %78 = vector.broadcast %cst_26 : f32 to vector<1x128xf32>
    %79 = arith.mulf %75, %78 : vector<1x128xf32>
    %80 = arith.mulf %77, %77 : vector<1x128xf32>
    %81 = arith.subf %79, %80 : vector<1x128xf32>
    %cst_27 = arith.constant 9.99999974E-6 : f32
    %82 = vector.broadcast %cst_27 : f32 to vector<1x128xf32>
    %83 = arith.addf %81, %82 : vector<1x128xf32>
    %84 = math.rsqrt %83 : vector<1x128xf32>
    %85 = arith.mulf %65, %84 : vector<1x128xf32>
    %86 = arith.mulf %77, %85 : vector<1x128xf32>
    %87 = arith.subf %66, %86 : vector<1x128xf32>
    %88 = vector.broadcast %85 : vector<1x128xf32> to vector<16x128xf32>
    %89 = arith.mulf %63, %88 : vector<16x128xf32>
    %90 = vector.broadcast %87 : vector<1x128xf32> to vector<16x128xf32>
    %91 = arith.addf %89, %90 : vector<16x128xf32>
    %cst_28 = arith.constant 0.000000e+00 : f32
    %92 = vector.broadcast %cst_28 : f32 to vector<16x128xf32>
    %93 = arith.maximumf %91, %92 : vector<16x128xf32>
    %94 = arith.truncf %93 : vector<16x128xf32> to vector<16x128xbf16>
    %95 = vector.extract_strided_slice %94 {offsets = [0, 0], sizes = [16, 80], strides = [1, 1]} : vector<16x128xbf16> to vector<16x80xbf16>
    %cst_29 = arith.constant dense<0.000000e+00> : vector<16x128xf32>
    %96 = tpu.matmul %95, %69, %cst_29 {dimension_numbers = #tpu.dot_dimension_numbers<[1], [0], [0], [1], [0, 0, 1, 1], [], []>} : vector<16x80xbf16>, vector<80x128xbf16>, vector<16x128xf32> -> vector<16x128xf32>
    %cst_30 = arith.constant dense<0.000000e+00> : vector<128xf32>
    %97 = vector.multi_reduction <add>, %96, %cst_30 [0] : vector<16x128xf32> to vector<128xf32>
    %98 = vector.shape_cast %97 : vector<128xf32> to vector<1x128xf32>
    %99 = arith.mulf %96, %96 : vector<16x128xf32>
    %cst_31 = arith.constant dense<0.000000e+00> : vector<128xf32>
    %100 = vector.multi_reduction <add>, %99, %cst_31 [0] : vector<16x128xf32> to vector<128xf32>
    %101 = vector.shape_cast %100 : vector<128xf32> to vector<1x128xf32>
    %cst_32 = arith.constant 6.250000e-02 : f32
    %102 = vector.broadcast %cst_32 : f32 to vector<1x128xf32>
    %103 = arith.mulf %98, %102 : vector<1x128xf32>
    %cst_33 = arith.constant 6.250000e-02 : f32
    %104 = vector.broadcast %cst_33 : f32 to vector<1x128xf32>
    %105 = arith.mulf %101, %104 : vector<1x128xf32>
    %106 = arith.mulf %103, %103 : vector<1x128xf32>
    %107 = arith.subf %105, %106 : vector<1x128xf32>
    %cst_34 = arith.constant 9.99999974E-6 : f32
    %108 = vector.broadcast %cst_34 : f32 to vector<1x128xf32>
    %109 = arith.addf %107, %108 : vector<1x128xf32>
    %110 = math.rsqrt %109 : vector<1x128xf32>
    %111 = arith.mulf %67, %110 : vector<1x128xf32>
    %112 = arith.mulf %103, %111 : vector<1x128xf32>
    %113 = arith.subf %68, %112 : vector<1x128xf32>
    %114 = vector.broadcast %111 : vector<1x128xf32> to vector<16x128xf32>
    %115 = arith.mulf %96, %114 : vector<16x128xf32>
    %116 = vector.broadcast %113 : vector<1x128xf32> to vector<16x128xf32>
    %117 = arith.addf %115, %116 : vector<16x128xf32>
    %cst_35 = arith.constant 0.000000e+00 : f32
    %118 = vector.broadcast %cst_35 : f32 to vector<16x128xf32>
    %119 = arith.maximumf %117, %118 : vector<16x128xf32>
    %c32_i32 = arith.constant 32 : i32
    %120 = tpu.dynamic_rotate %63 by %c32_i32 dim 1 : vector<16x128xf32>, i32 -> vector<16x128xf32>
    %121 = arith.addf %119, %120 : vector<16x128xf32>
    %122 = arith.truncf %121 : vector<16x128xf32> to vector<16x128xbf16>
    %123 = vector.extract_strided_slice %122 {offsets = [0, 0], sizes = [16, 112], strides = [1, 1]} : vector<16x128xbf16> to vector<16x112xbf16>
    %cst_36 = arith.constant dense<0.000000e+00> : vector<16x128xf32>
    %124 = tpu.matmul %123, %70, %cst_36 {dimension_numbers = #tpu.dot_dimension_numbers<[1], [0], [0], [1], [0, 0, 1, 1], [], []>} : vector<16x112xbf16>, vector<112x128xbf16>, vector<16x128xf32> -> vector<16x128xf32>
    %cst_37 = arith.constant 0.000000e+00 : f32
    %125 = vector.broadcast %cst_37 : f32 to vector<16x128xf32>
    %126 = arith.maximumf %124, %125 : vector<16x128xf32>
    %c16_38 = arith.constant 16 : index
    %c0_39 = arith.constant 0 : index
    %127 = vector.load %arg1[%c16_38, %c0_39] : memref<32x128xf32, #tpu.memory_space<vmem>>, vector<8x128xf32>
    %128 = vector.extract_strided_slice %127 {offsets = [0, 0], sizes = [1, 128], strides = [1, 1]} : vector<8x128xf32> to vector<1x128xf32>
    %129 = vector.extract_strided_slice %127 {offsets = [1, 0], sizes = [1, 128], strides = [1, 1]} : vector<8x128xf32> to vector<1x128xf32>
    %130 = vector.extract_strided_slice %127 {offsets = [2, 0], sizes = [1, 128], strides = [1, 1]} : vector<8x128xf32> to vector<1x128xf32>
    %131 = vector.extract_strided_slice %127 {offsets = [3, 0], sizes = [1, 128], strides = [1, 1]} : vector<8x128xf32> to vector<1x128xf32>
    %c288 = arith.constant 288 : index
    %c0_40 = arith.constant 0 : index
    %132 = vector.load %arg2[%c288, %c0_40] : memref<480x128xbf16, #tpu.memory_space<vmem>>, vector<48x128xbf16>
    %c336 = arith.constant 336 : index
    %c0_41 = arith.constant 0 : index
    %133 = vector.load %arg2[%c336, %c0_41] : memref<480x128xbf16, #tpu.memory_space<vmem>>, vector<64x128xbf16>
    %cst_42 = arith.constant dense<0.000000e+00> : vector<128xf32>
    %134 = vector.multi_reduction <add>, %126, %cst_42 [0] : vector<16x128xf32> to vector<128xf32>
    %135 = vector.shape_cast %134 : vector<128xf32> to vector<1x128xf32>
    %136 = arith.mulf %126, %126 : vector<16x128xf32>
    %cst_43 = arith.constant dense<0.000000e+00> : vector<128xf32>
    %137 = vector.multi_reduction <add>, %136, %cst_43 [0] : vector<16x128xf32> to vector<128xf32>
    %138 = vector.shape_cast %137 : vector<128xf32> to vector<1x128xf32>
    %cst_44 = arith.constant 6.250000e-02 : f32
    %139 = vector.broadcast %cst_44 : f32 to vector<1x128xf32>
    %140 = arith.mulf %135, %139 : vector<1x128xf32>
    %cst_45 = arith.constant 6.250000e-02 : f32
    %141 = vector.broadcast %cst_45 : f32 to vector<1x128xf32>
    %142 = arith.mulf %138, %141 : vector<1x128xf32>
    %143 = arith.mulf %140, %140 : vector<1x128xf32>
    %144 = arith.subf %142, %143 : vector<1x128xf32>
    %cst_46 = arith.constant 9.99999974E-6 : f32
    %145 = vector.broadcast %cst_46 : f32 to vector<1x128xf32>
    %146 = arith.addf %144, %145 : vector<1x128xf32>
    %147 = math.rsqrt %146 : vector<1x128xf32>
    %148 = arith.mulf %128, %147 : vector<1x128xf32>
    %149 = arith.mulf %140, %148 : vector<1x128xf32>
    %150 = arith.subf %129, %149 : vector<1x128xf32>
    %151 = vector.broadcast %148 : vector<1x128xf32> to vector<16x128xf32>
    %152 = arith.mulf %126, %151 : vector<16x128xf32>
    %153 = vector.broadcast %150 : vector<1x128xf32> to vector<16x128xf32>
    %154 = arith.addf %152, %153 : vector<16x128xf32>
    %cst_47 = arith.constant 0.000000e+00 : f32
    %155 = vector.broadcast %cst_47 : f32 to vector<16x128xf32>
    %156 = arith.maximumf %154, %155 : vector<16x128xf32>
    %157 = arith.truncf %156 : vector<16x128xf32> to vector<16x128xbf16>
    %158 = vector.extract_strided_slice %157 {offsets = [0, 0], sizes = [16, 48], strides = [1, 1]} : vector<16x128xbf16> to vector<16x48xbf16>
    %cst_48 = arith.constant dense<0.000000e+00> : vector<16x128xf32>
    %159 = tpu.matmul %158, %132, %cst_48 {dimension_numbers = #tpu.dot_dimension_numbers<[1], [0], [0], [1], [0, 0, 1, 1], [], []>} : vector<16x48xbf16>, vector<48x128xbf16>, vector<16x128xf32> -> vector<16x128xf32>
    %cst_49 = arith.constant dense<0.000000e+00> : vector<128xf32>
    %160 = vector.multi_reduction <add>, %159, %cst_49 [0] : vector<16x128xf32> to vector<128xf32>
    %161 = vector.shape_cast %160 : vector<128xf32> to vector<1x128xf32>
    %162 = arith.mulf %159, %159 : vector<16x128xf32>
    %cst_50 = arith.constant dense<0.000000e+00> : vector<128xf32>
    %163 = vector.multi_reduction <add>, %162, %cst_50 [0] : vector<16x128xf32> to vector<128xf32>
    %164 = vector.shape_cast %163 : vector<128xf32> to vector<1x128xf32>
    %cst_51 = arith.constant 6.250000e-02 : f32
    %165 = vector.broadcast %cst_51 : f32 to vector<1x128xf32>
    %166 = arith.mulf %161, %165 : vector<1x128xf32>
    %cst_52 = arith.constant 6.250000e-02 : f32
    %167 = vector.broadcast %cst_52 : f32 to vector<1x128xf32>
    %168 = arith.mulf %164, %167 : vector<1x128xf32>
    %169 = arith.mulf %166, %166 : vector<1x128xf32>
    %170 = arith.subf %168, %169 : vector<1x128xf32>
    %cst_53 = arith.constant 9.99999974E-6 : f32
    %171 = vector.broadcast %cst_53 : f32 to vector<1x128xf32>
    %172 = arith.addf %170, %171 : vector<1x128xf32>
    %173 = math.rsqrt %172 : vector<1x128xf32>
    %174 = arith.mulf %130, %173 : vector<1x128xf32>
    %175 = arith.mulf %166, %174 : vector<1x128xf32>
    %176 = arith.subf %131, %175 : vector<1x128xf32>
    %177 = vector.broadcast %174 : vector<1x128xf32> to vector<16x128xf32>
    %178 = arith.mulf %159, %177 : vector<16x128xf32>
    %179 = vector.broadcast %176 : vector<1x128xf32> to vector<16x128xf32>
    %180 = arith.addf %178, %179 : vector<16x128xf32>
    %cst_54 = arith.constant 0.000000e+00 : f32
    %181 = vector.broadcast %cst_54 : f32 to vector<16x128xf32>
    %182 = arith.maximumf %180, %181 : vector<16x128xf32>
    %c16_i32 = arith.constant 16 : i32
    %183 = tpu.dynamic_rotate %126 by %c16_i32 dim 1 : vector<16x128xf32>, i32 -> vector<16x128xf32>
    %184 = arith.addf %182, %183 : vector<16x128xf32>
    %185 = arith.truncf %184 : vector<16x128xf32> to vector<16x128xbf16>
    %186 = vector.extract_strided_slice %185 {offsets = [0, 0], sizes = [16, 64], strides = [1, 1]} : vector<16x128xbf16> to vector<16x64xbf16>
    %cst_55 = arith.constant dense<0.000000e+00> : vector<16x128xf32>
    %187 = tpu.matmul %186, %133, %cst_55 {dimension_numbers = #tpu.dot_dimension_numbers<[1], [0], [0], [1], [0, 0, 1, 1], [], []>} : vector<16x64xbf16>, vector<64x128xbf16>, vector<16x128xf32> -> vector<16x128xf32>
    %cst_56 = arith.constant 0.000000e+00 : f32
    %188 = vector.broadcast %cst_56 : f32 to vector<16x128xf32>
    %189 = arith.maximumf %187, %188 : vector<16x128xf32>
    %c24 = arith.constant 24 : index
    %c0_57 = arith.constant 0 : index
    %190 = vector.load %arg1[%c24, %c0_57] : memref<32x128xf32, #tpu.memory_space<vmem>>, vector<8x128xf32>
    %191 = vector.extract_strided_slice %190 {offsets = [0, 0], sizes = [1, 128], strides = [1, 1]} : vector<8x128xf32> to vector<1x128xf32>
    %192 = vector.extract_strided_slice %190 {offsets = [1, 0], sizes = [1, 128], strides = [1, 1]} : vector<8x128xf32> to vector<1x128xf32>
    %193 = vector.extract_strided_slice %190 {offsets = [2, 0], sizes = [1, 128], strides = [1, 1]} : vector<8x128xf32> to vector<1x128xf32>
    %194 = vector.extract_strided_slice %190 {offsets = [3, 0], sizes = [1, 128], strides = [1, 1]} : vector<8x128xf32> to vector<1x128xf32>
    %c400 = arith.constant 400 : index
    %c0_58 = arith.constant 0 : index
    %195 = vector.load %arg2[%c400, %c0_58] : memref<480x128xbf16, #tpu.memory_space<vmem>>, vector<32x128xbf16>
    %c432 = arith.constant 432 : index
    %c0_59 = arith.constant 0 : index
    %196 = vector.load %arg2[%c432, %c0_59] : memref<480x128xbf16, #tpu.memory_space<vmem>>, vector<32x128xbf16>
    %cst_60 = arith.constant dense<0.000000e+00> : vector<128xf32>
    %197 = vector.multi_reduction <add>, %189, %cst_60 [0] : vector<16x128xf32> to vector<128xf32>
    %198 = vector.shape_cast %197 : vector<128xf32> to vector<1x128xf32>
    %199 = arith.mulf %189, %189 : vector<16x128xf32>
    %cst_61 = arith.constant dense<0.000000e+00> : vector<128xf32>
    %200 = vector.multi_reduction <add>, %199, %cst_61 [0] : vector<16x128xf32> to vector<128xf32>
    %201 = vector.shape_cast %200 : vector<128xf32> to vector<1x128xf32>
    %cst_62 = arith.constant 6.250000e-02 : f32
    %202 = vector.broadcast %cst_62 : f32 to vector<1x128xf32>
    %203 = arith.mulf %198, %202 : vector<1x128xf32>
    %cst_63 = arith.constant 6.250000e-02 : f32
    %204 = vector.broadcast %cst_63 : f32 to vector<1x128xf32>
    %205 = arith.mulf %201, %204 : vector<1x128xf32>
    %206 = arith.mulf %203, %203 : vector<1x128xf32>
    %207 = arith.subf %205, %206 : vector<1x128xf32>
    %cst_64 = arith.constant 9.99999974E-6 : f32
    %208 = vector.broadcast %cst_64 : f32 to vector<1x128xf32>
    %209 = arith.addf %207, %208 : vector<1x128xf32>
    %210 = math.rsqrt %209 : vector<1x128xf32>
    %211 = arith.mulf %191, %210 : vector<1x128xf32>
    %212 = arith.mulf %203, %211 : vector<1x128xf32>
    %213 = arith.subf %192, %212 : vector<1x128xf32>
    %214 = vector.broadcast %211 : vector<1x128xf32> to vector<16x128xf32>
    %215 = arith.mulf %189, %214 : vector<16x128xf32>
    %216 = vector.broadcast %213 : vector<1x128xf32> to vector<16x128xf32>
    %217 = arith.addf %215, %216 : vector<16x128xf32>
    %cst_65 = arith.constant 0.000000e+00 : f32
    %218 = vector.broadcast %cst_65 : f32 to vector<16x128xf32>
    %219 = arith.maximumf %217, %218 : vector<16x128xf32>
    %220 = arith.truncf %219 : vector<16x128xf32> to vector<16x128xbf16>
    %221 = vector.extract_strided_slice %220 {offsets = [0, 0], sizes = [16, 32], strides = [1, 1]} : vector<16x128xbf16> to vector<16x32xbf16>
    %cst_66 = arith.constant dense<0.000000e+00> : vector<16x128xf32>
    %222 = tpu.matmul %221, %195, %cst_66 {dimension_numbers = #tpu.dot_dimension_numbers<[1], [0], [0], [1], [0, 0, 1, 1], [], []>} : vector<16x32xbf16>, vector<32x128xbf16>, vector<16x128xf32> -> vector<16x128xf32>
    %cst_67 = arith.constant dense<0.000000e+00> : vector<128xf32>
    %223 = vector.multi_reduction <add>, %222, %cst_67 [0] : vector<16x128xf32> to vector<128xf32>
    %224 = vector.shape_cast %223 : vector<128xf32> to vector<1x128xf32>
    %225 = arith.mulf %222, %222 : vector<16x128xf32>
    %cst_68 = arith.constant dense<0.000000e+00> : vector<128xf32>
    %226 = vector.multi_reduction <add>, %225, %cst_68 [0] : vector<16x128xf32> to vector<128xf32>
    %227 = vector.shape_cast %226 : vector<128xf32> to vector<1x128xf32>
    %cst_69 = arith.constant 6.250000e-02 : f32
    %228 = vector.broadcast %cst_69 : f32 to vector<1x128xf32>
    %229 = arith.mulf %224, %228 : vector<1x128xf32>
    %cst_70 = arith.constant 6.250000e-02 : f32
    %230 = vector.broadcast %cst_70 : f32 to vector<1x128xf32>
    %231 = arith.mulf %227, %230 : vector<1x128xf32>
    %232 = arith.mulf %229, %229 : vector<1x128xf32>
    %233 = arith.subf %231, %232 : vector<1x128xf32>
    %cst_71 = arith.constant 9.99999974E-6 : f32
    %234 = vector.broadcast %cst_71 : f32 to vector<1x128xf32>
    %235 = arith.addf %233, %234 : vector<1x128xf32>
    %236 = math.rsqrt %235 : vector<1x128xf32>
    %237 = arith.mulf %193, %236 : vector<1x128xf32>
    %238 = arith.mulf %229, %237 : vector<1x128xf32>
    %239 = arith.subf %194, %238 : vector<1x128xf32>
    %240 = vector.broadcast %237 : vector<1x128xf32> to vector<16x128xf32>
    %241 = arith.mulf %222, %240 : vector<16x128xf32>
    %242 = vector.broadcast %239 : vector<1x128xf32> to vector<16x128xf32>
    %243 = arith.addf %241, %242 : vector<16x128xf32>
    %cst_72 = arith.constant 0.000000e+00 : f32
    %244 = vector.broadcast %cst_72 : f32 to vector<16x128xf32>
    %245 = arith.maximumf %243, %244 : vector<16x128xf32>
    %c8_i32 = arith.constant 8 : i32
    %246 = tpu.dynamic_rotate %189 by %c8_i32 dim 1 : vector<16x128xf32>, i32 -> vector<16x128xf32>
    %247 = arith.addf %245, %246 : vector<16x128xf32>
    %248 = arith.truncf %247 : vector<16x128xf32> to vector<16x128xbf16>
    %249 = vector.extract_strided_slice %248 {offsets = [0, 0], sizes = [16, 32], strides = [1, 1]} : vector<16x128xbf16> to vector<16x32xbf16>
    %cst_73 = arith.constant dense<0.000000e+00> : vector<16x128xf32>
    %250 = tpu.matmul %249, %196, %cst_73 {dimension_numbers = #tpu.dot_dimension_numbers<[1], [0], [0], [1], [0, 0, 1, 1], [], []>} : vector<16x32xbf16>, vector<32x128xbf16>, vector<16x128xf32> -> vector<16x128xf32>
    %cst_74 = arith.constant 0.000000e+00 : f32
    %251 = vector.broadcast %cst_74 : f32 to vector<16x128xf32>
    %252 = arith.maximumf %250, %251 : vector<16x128xf32>
    %c464 = arith.constant 464 : index
    %c0_75 = arith.constant 0 : index
    %253 = vector.load %arg2[%c464, %c0_75] : memref<480x128xbf16, #tpu.memory_space<vmem>>, vector<16x128xbf16>
    %254 = arith.truncf %252 : vector<16x128xf32> to vector<16x128xbf16>
    %255 = vector.extract_strided_slice %254 {offsets = [0, 0], sizes = [16, 16], strides = [1, 1]} : vector<16x128xbf16> to vector<16x16xbf16>
    %cst_76 = arith.constant dense<0.000000e+00> : vector<16x128xf32>
    %256 = tpu.matmul %255, %253, %cst_76 {dimension_numbers = #tpu.dot_dimension_numbers<[1], [0], [0], [1], [0, 0, 1, 1], [], []>} : vector<16x16xbf16>, vector<16x128xbf16>, vector<16x128xf32> -> vector<16x128xf32>
    %c0_77 = arith.constant 0 : index
    %c0_78 = arith.constant 0 : index
    %257 = vector.load %arg3[%c0_77, %c0_78] : memref<16x128xf32, #tpu.memory_space<vmem>>, vector<16x128xf32>
    tpu.vector_store %arg3[%c0_77, %c0_78], %256 {strides = array<i32>} : memref<16x128xf32, #tpu.memory_space<vmem>>, vector<16x128xf32>,
    return
  }
}

</mosaic_0001>

<bundles_post_ra>
// kernel: forward.1
= control target key start
LH: loop header
LB: loop body
LE: loop exit
PB: predicated region body
PF: predicated region fallthrough
CT: control target
= control target key end

     0   :  { %8 = vsyncpa [#allocation3], 0  ;;  %s1105_s15 = smov [#allocation2]   ;;  %s1106_s17 = smov 64   ;;  %s1188_s0 = inlined_call_operand.vmem [shape: f32[16,128], index: 0, kind: input, shape index: {}]   ;;  %s1189_s1 = inlined_call_operand.vmem [shape: f32[32,128], index: 1, kind: input, shape index: {}]   ;;  %s1190_s2 = inlined_call_operand.hbm [shape: bf16[480,128], index: 2, kind: input, shape index: {}]   ;;  %s1191_s3 = inlined_call_operand.vmem [shape: f32[16,128], index: 3, kind: output, shape index: {}]  }
   0x1   :  { %s17_s14 = sshll.u32 %s1190_s2, 4  ;;  %s19_s16 = sshll.u32 %s1105_s15, 4  ;;  %s18_s14 = int_to_ptr.hbm [resolvable:$true] %s17_s14  ;;  %s20_s16 = int_to_ptr.vmem [resolvable:$true] %s19_s16 }
   0x2   :  { %s1107_s18 = smov 4  }
   0x3   :  { %25 = dma.hbm_to_vmem [thread:$0]  %s18_s14, 3840, %s20_s16, [#allocation3], %s1106_s17, %s1106_s17, %s1107_s18  }
   0x4   :  { %1103 = dma.done.wait [#allocation3], 3840  }
   0x5   :  { %1104 = vsyncadd [#allocation3], 4294963456  ;;  %v1027_v0 = vld [vmem:[#allocation2] sm:$0xff]  ;;  %v32_v2 = vld [vmem:[%s1188_s0 + $0x8] sm:$0xff]  ;;  %vm104_vm3 = vcmask 130048   ;;  %vm210_vm7 = vcmask 654336  }
   0x6   :  { %v31_v1 = vld [vmem:[%s1188_s0] sm:$0xff]  ;;  %v54_v5 = vmul.f32 %v32_v2, %v32_v2  ;;  %115 = vmatpush.bf16.msra.mxu0 %v1027_v0  ;;  %v1032_v62 = vld [vmem:[#allocation2 + $0x28] sm:$0xff]  ;;  %s1108_s23 = smov 32   ;;  %vm454_vm14 = vcmask 916480   ;;  %s1109_s26 = smov 16  }
   0x7   :  { %v46_v3 = vadd.f32 %v32_v2, %v31_v1  ;;  %v53_v4 = vmul.f32 %v31_v1, %v31_v1  ;;  %167 = vrot.lane.b32.xlu0 %v31_v1, %s1106_s17  ;;  %v1143_v29 = vld [vmem:[%s1189_s1] sm:$0xff]  ;;  %217 = vmatpush.bf16.msra.mxu1 %v1032_v62  ;;  %s1110_s29 = smov 8  }
   0x8   :  { %v1035_v62 = vld [vmem:[#allocation2 + $0x40] sm:$0xff] }
   0x9   :  { %v47_v6 = vrot.slane %v46_v3, 4  ;;  %v55_v7 = vadd.f32 %v54_v5, %v53_v4 }
   0xb   :  { %v48_v8 = vadd.f32 %v47_v6, %v46_v3  ;;  %v56_v9 = vrot.slane %v55_v7, 4  ;;  %v1031_v3 = vld [vmem:[#allocation2 + $0x20] sm:$0xff] }
   0xc   :  { %218 = vmatpush.bf16.msra.mxu1 %v1031_v3  ;;  %v1034_v3 = vld [vmem:[#allocation2 + $0x38] sm:$0xff] }
   0xd   :  { %v49_v10 = vrot.slane %v48_v8, 2  ;;  %v57_v11 = vadd.f32 %v56_v9, %v55_v7 }
   0xf   :  { %v50_v12 = vadd.f32 %v49_v10, %v48_v8  ;;  %v58_v13 = vrot.slane %v57_v11, 2  ;;  %169 = vrot.lane.b32.xlu0 %v32_v2, %s1106_s17  ;;  %v1030_v8 = vld [vmem:[#allocation2 + $0x18] sm:$0xff] }
  0x10   :  { %219 = vmatpush.bf16.msra.mxu1 %v1030_v8 }
  0x11   :  { %v51_v14 = vrot.slane %v50_v12, 1  ;;  %v59_v15 = vadd.f32 %v58_v13, %v57_v11  ;;  %v1029_v11 = vld [vmem:[#allocation2 + $0x10] sm:$0xff] }
  0x13   :  { %v52_v16 = vadd.f32 %v51_v14, %v50_v12  ;;  %v60_v17 = vrot.slane %v59_v15, 1  ;;  %v1028_v12 = vld [vmem:[#allocation2 + $0x8] sm:$0xff] }
  0x14   :  { %220 = vmatpush.bf16.msra.mxu1 %v1029_v11 }
  0x15   :  { %v61_v18 = vadd.f32 %v60_v17, %v59_v15  ;;  %v62_v19 = vmul.f32 0.0625, %v52_v16 }
  0x17   :  { %v63_v20 = vmul.f32 0.0625, %v61_v18  ;;  %v64_v21 = vmul.f32 %v62_v19, %v62_v19 }
  0x18   :  { %221 = vmatpush.bf16.msra.mxu1 %v1028_v12  ;;  %v1154_v12 = vld [vmem:[%s1189_s1 + $0x8] sm:$0xff] }
  0x19   :  { %v65_v22 = vsub.f32 %v63_v20, %v64_v21 }
  0x1b   :  { %v66_v23 = vadd.f32 1e-05, %v65_v22 }
  0x1d   :  { %1063 = vrsqrt.f32 %v66_v23  ;;  %vm73_vm0 = vweird.f32 %v66_v23 }
  0x23   :  { %v1064_v24 = vpop.eup %1063 }
  0x24   :  { %v68_v25 = vmul.f32 %v1064_v24, %v66_v23  ;;  %vm74_vm1 = vweird.f32 %v1064_v24 }
  0x25   :  { %vm75_vm2 = vmor %vm73_vm0, %vm74_vm1 }
  0x26   :  { %v69_v26 = vmul.f32 %v1064_v24, %v68_v25 }
  0x28   :  { %v70_v27 = vmul.f32 0.5, %v69_v26 }
  0x2a   :  { %v71_v28 = vsub.f32 1.5, %v70_v27 }
  0x2c   :  { %v72_v30 = vmul.f32 %v1064_v24, %v71_v28 }
  0x2e   :  { %v76_v31 = vsel %vm75_vm2, %v1064_v24, %v72_v30  ;;  %vm559_vm2 = vcmask 392192  }
  0x2f   :  { %v77_v32 = vmul.f32 %v76_v31, %v1143_v29 }
  0x31   :  { %v78_v33 = vmul.f32 %v77_v32, %v62_v19  ;;  %v83_v34 = vperm.slane %v77_v32, 0 }
  0x33   :  { %v80_v35 = vrot.slane %v78_v33, 7  ;;  %v84_v37 = vmul.f32 %v83_v34, %v31_v1  ;;  %v85_v38 = vmul.f32 %v83_v34, %v32_v2 }
  0x35   :  { %v82_v36 = vsub.f32 %v1143_v29, %v80_v35 }
  0x37   :  { %v86_v39 = vperm.slane %v82_v36, 1 }
  0x39   :  { %v87_v40 = vadd.f32 %v86_v39, %v84_v37  ;;  %v88_v41 = vadd.f32 %v86_v39, %v85_v38 }
  0x3b   :  { %v89_v42 = vmax.f32 %v87_v40, 0.0  ;;  %v90_v43 = vmax.f32 %v88_v41, 0.0 }
  0x3d   :  { %v91_v44 = vpack.c.bf16 %v89_v42, %v89_v42  ;;  %v92_v45 = vpack.c.bf16 %v90_v43, %v90_v43 }
  0x3f   :  { %v95_v46 = vunpack.c.l.b16 %v91_v44  ;;  %v96_v47 = vunpack.c.l.b16 %v92_v45 }
  0x41   :  { %v97_v48 = vpack.c.b16 %v96_v47, %v95_v46 }
  0x43   :  { %902 = vmatmul.msk.bf16.vlgmr.msra.gmra.mxu0 %vm104_vm3, %v97_v48 }
  0x79   :  { %v168_v21 = vpop.permute.xlu0 %167 }
  0x81   :  { %v170_v32 = vpop.permute.xlu0 %169 }
  0xc0   :  { %v117_v49 = vpop.f32.mrf.mxu0 }
  0xc1   :  { %v129_v51 = vmul.f32 %v117_v49, %v117_v49 }
  0xc8   :  { %v119_v50 = vpop.f32.mrf.mxu0 }
  0xc9   :  { %v122_v52 = vadd.f32 %v119_v50, %v117_v49  ;;  %v130_v53 = vmul.f32 %v119_v50, %v119_v50 }
  0xcb   :  { %v123_v54 = vrot.slane %v122_v52, 4  ;;  %v131_v55 = vadd.f32 %v130_v53, %v129_v51 }
  0xcd   :  { %v124_v56 = vadd.f32 %v123_v54, %v122_v52  ;;  %v132_v57 = vrot.slane %v131_v55, 4  ;;  %v1037_v54 = vld [vmem:[#allocation2 + $0x50] sm:$0xff] }
  0xce   :  { %343 = vmatpush.bf16.msra.mxu2 %v1037_v54 }
  0xcf   :  { %v125_v58 = vrot.slane %v124_v56, 2  ;;  %v133_v59 = vadd.f32 %v132_v57, %v131_v55 }
  0xd1   :  { %v126_v60 = vadd.f32 %v125_v58, %v124_v56  ;;  %v134_v61 = vrot.slane %v133_v59, 2 }
  0xd3   :  { %v127_v63 = vrot.slane %v126_v60, 1  ;;  %v135_v0 = vadd.f32 %v134_v61, %v133_v59  ;;  %v1036_v59 = vld [vmem:[#allocation2 + $0x48] sm:$0xff] }
  0xd4   :  { %344 = vmatpush.bf16.msra.mxu2 %v1036_v59 }
  0xd5   :  { %v128_v1 = vadd.f32 %v127_v63, %v126_v60  ;;  %v136_v2 = vrot.slane %v135_v0, 1 }
  0xd7   :  { %v137_v4 = vadd.f32 %v136_v2, %v135_v0  ;;  %v138_v5 = vmul.f32 0.0625, %v128_v1 }
  0xd8   :  { %345 = vmatpush.bf16.msra.mxu2 %v1035_v62 }
  0xd9   :  { %v139_v6 = vmul.f32 0.0625, %v137_v4  ;;  %v140_v7 = vmul.f32 %v138_v5, %v138_v5 }
  0xdb   :  { %v141_v9 = vsub.f32 %v139_v6, %v140_v7  ;;  %v1033_v6 = vld [vmem:[#allocation2 + $0x30] sm:$0xff] }
  0xdc   :  { %346 = vmatpush.bf16.msra.mxu2 %v1034_v3 }
  0xdd   :  { %v142_v10 = vadd.f32 1e-05, %v141_v9 }
  0xdf   :  { %1065 = vrsqrt.f32 %v142_v10  ;;  %vm149_vm5 = vweird.f32 %v142_v10 }
  0xe0   :  { %347 = vmatpush.bf16.msra.mxu2 %v1033_v6 }
  0xe5   :  { %v1066_v13 = vpop.eup %1065 }
  0xe6   :  { %v144_v14 = vmul.f32 %v1066_v13, %v142_v10  ;;  %vm150_vm4 = vweird.f32 %v1066_v13 }
  0xe7   :  { %vm151_vm6 = vmor %vm149_vm5, %vm150_vm4 }
  0xe8   :  { %v145_v15 = vmul.f32 %v1066_v13, %v144_v14 }
  0xea   :  { %v146_v16 = vmul.f32 0.5, %v145_v15 }
  0xec   :  { %v147_v17 = vsub.f32 1.5, %v146_v16 }
  0xee   :  { %v148_v18 = vmul.f32 %v1066_v13, %v147_v17 }
  0xf0   :  { %v152_v19 = vsel %vm151_vm6, %v1066_v13, %v148_v18 }
  0xf1   :  { %v153_v20 = vmul.f32 %v152_v19, %v1143_v29 }
  0xf3   :  { %v154_v22 = vmul.f32 %v153_v20, %v138_v5  ;;  %v159_v23 = vperm.slane %v153_v20, 2 }
  0xf5   :  { %v156_v24 = vrot.slane %v154_v22, 7  ;;  %v161_v26 = vmul.f32 %v159_v23, %v119_v50  ;;  %v160_v27 = vmul.f32 %v159_v23, %v117_v49 }
  0xf7   :  { %v158_v25 = vsub.f32 %v1143_v29, %v156_v24 }
  0xf9   :  { %v162_v28 = vperm.slane %v158_v25, 3 }
  0xfb   :  { %v163_v30 = vadd.f32 %v162_v28, %v160_v27  ;;  %v164_v31 = vadd.f32 %v162_v28, %v161_v26 }
  0xfd   :  { %v165_v33 = vmax.f32 %v163_v30, 0.0  ;;  %v166_v34 = vmax.f32 %v164_v31, 0.0 }
  0xff   :  { %v171_v35 = vadd.f32 %v168_v21, %v165_v33  ;;  %v172_v36 = vadd.f32 %v170_v32, %v166_v34 }
 0x101   :  { %v173_v37 = vpack.c.bf16 %v171_v35, %v171_v35  ;;  %v174_v38 = vpack.c.bf16 %v172_v36, %v172_v36 }
 0x103   :  { %v177_v39 = vunpack.c.l.b16 %v173_v37  ;;  %v178_v40 = vunpack.c.l.b16 %v174_v38  ;;  %v1044_v38 = vld [vmem:[#allocation2 + $0x88] sm:$0xff] }
 0x104   :  { %459 = vmatpush.bf16.msra.mxu3 %v1044_v38 }
 0x105   :  { %v179_v41 = vpack.c.b16 %v178_v40, %v177_v39 }
 0x107   :  { %923 = vmatmul.msk.bf16.vlgmr.msra.gmra.mxu1 %vm210_vm7, %v179_v41 }
 0x184   :  { %v223_v42 = vpop.f32.mrf.mxu1 }
 0x185   :  { %v228_v29 = vmax.f32 %v223_v42, 0.0 }
 0x187   :  { %399 = vrot.lane.b32.xlu1 %v228_v29, %s1108_s23  ;;  %v262_v45 = vmul.f32 %v228_v29, %v228_v29 }
 0x18c   :  { %v225_v43 = vpop.f32.mrf.mxu1 }
 0x18d   :  { %v229_v44 = vmax.f32 %v225_v43, 0.0 }
 0x18f   :  { %v255_v46 = vadd.f32 %v229_v44, %v228_v29  ;;  %v263_v47 = vmul.f32 %v229_v44, %v229_v44  ;;  %401 = vrot.lane.b32.xlu1 %v229_v44, %s1108_s23 }
 0x191   :  { %v256_v48 = vrot.slane %v255_v46, 4  ;;  %v264_v49 = vadd.f32 %v263_v47, %v262_v45  ;;  %v1042_v47 = vld [vmem:[#allocation2 + $0x78] sm:$0xff] }
 0x193   :  { %v257_v50 = vadd.f32 %v256_v48, %v255_v46  ;;  %v265_v51 = vrot.slane %v264_v49, 4 }
 0x195   :  { %v258_v52 = vrot.slane %v257_v50, 2  ;;  %v266_v53 = vadd.f32 %v265_v51, %v264_v49 }
 0x197   :  { %v259_v55 = vadd.f32 %v258_v52, %v257_v50  ;;  %v267_v56 = vrot.slane %v266_v53, 2  ;;  %v1041_v52 = vld [vmem:[#allocation2 + $0x70] sm:$0xff] }
 0x199   :  { %v260_v57 = vrot.slane %v259_v55, 1  ;;  %v268_v58 = vadd.f32 %v267_v56, %v266_v53 }
 0x19b   :  { %v261_v60 = vadd.f32 %v260_v57, %v259_v55  ;;  %v269_v61 = vrot.slane %v268_v58, 1  ;;  %v1040_v57 = vld [vmem:[#allocation2 + $0x68] sm:$0xff] }
 0x19d   :  { %v270_v63 = vadd.f32 %v269_v61, %v268_v58  ;;  %v271_v0 = vmul.f32 0.0625, %v261_v60  ;;  %v1039_v60 = vld [vmem:[#allocation2 + $0x60] sm:$0xff]  ;;  %v1038_v61 = vld [vmem:[#allocation2 + $0x58] sm:$0xff] }
 0x19f   :  { %v272_v1 = vmul.f32 0.0625, %v270_v63  ;;  %v273_v2 = vmul.f32 %v271_v0, %v271_v0 }
 0x1a1   :  { %v274_v4 = vsub.f32 %v272_v1, %v273_v2 }
 0x1a3   :  { %v275_v5 = vadd.f32 1e-05, %v274_v4 }
 0x1a5   :  { %1067 = vrsqrt.f32 %v275_v5  ;;  %vm282_vm9 = vweird.f32 %v275_v5 }
 0x1ab   :  { %v1068_v7 = vpop.eup %1067 }
 0x1ac   :  { %v277_v8 = vmul.f32 %v1068_v7, %v275_v5  ;;  %vm283_vm8 = vweird.f32 %v1068_v7 }
 0x1ad   :  { %vm284_vm10 = vmor %vm282_vm9, %vm283_vm8 }
 0x1ae   :  { %v278_v9 = vmul.f32 %v1068_v7, %v277_v8 }
 0x1b0   :  { %v279_v10 = vmul.f32 0.5, %v278_v9 }
 0x1b2   :  { %v280_v11 = vsub.f32 1.5, %v279_v10 }
 0x1b4   :  { %v281_v13 = vmul.f32 %v1068_v7, %v280_v11 }
 0x1b6   :  { %v285_v14 = vsel %vm284_vm10, %v1068_v7, %v281_v13 }
 0x1b7   :  { %v286_v15 = vmul.f32 %v285_v14, %v1154_v12 }
 0x1b9   :  { %v287_v16 = vmul.f32 %v286_v15, %v271_v0  ;;  %v292_v17 = vperm.slane %v286_v15, 0 }
 0x1bb   :  { %v289_v18 = vrot.slane %v287_v16, 7  ;;  %v294_v20 = vmul.f32 %v292_v17, %v229_v44  ;;  %v293_v21 = vmul.f32 %v292_v17, %v228_v29  ;;  %v1043_v29 = vld [vmem:[#allocation2 + $0x80] sm:$0xff] }
 0x1bc   :  { %460 = vmatpush.bf16.msra.mxu3 %v1043_v29 }
 0x1bd   :  { %v291_v19 = vsub.f32 %v1154_v12, %v289_v18 }
 0x1bf   :  { %v295_v22 = vperm.slane %v291_v19, 1 }
 0x1c0   :  { %461 = vmatpush.bf16.msra.mxu3 %v1042_v47  ;;  %v1047_v47 = vld [vmem:[#allocation2 + $0xa0] sm:$0xff] }
 0x1c1   :  { %v296_v23 = vadd.f32 %v295_v22, %v293_v21  ;;  %v297_v24 = vadd.f32 %v295_v22, %v294_v20  ;;  %568 = vmatpush.bf16.msrb.mxu0 %v1047_v47 }
 0x1c3   :  { %v298_v25 = vmax.f32 %v296_v23, 0.0  ;;  %v299_v26 = vmax.f32 %v297_v24, 0.0 }
 0x1c4   :  { %462 = vmatpush.bf16.msra.mxu3 %v1041_v52 }
 0x1c5   :  { %v300_v27 = vpack.c.bf16 %v298_v25, %v298_v25  ;;  %v301_v28 = vpack.c.bf16 %v299_v26, %v299_v26 }
 0x1c7   :  { %v304_v30 = vunpack.c.l.b16 %v300_v27  ;;  %v305_v31 = vunpack.c.l.b16 %v301_v28 }
 0x1c8   :  { %463 = vmatpush.bf16.msra.mxu3 %v1040_v57 }
 0x1c9   :  { %v306_v32 = vpack.c.b16 %v305_v31, %v304_v30 }
 0x1cb   :  { %944 = vmatmul.msk.bf16.vlgmr.msra.gmra.mxu2 %vm210_vm7, %v306_v32  ;;  %vm659_vm7 = vcmask 523264  }
 0x1cc   :  { %464 = vmatpush.bf16.msra.mxu3 %v1039_v60 }
 0x1d0   :  { %465 = vmatpush.bf16.msra.mxu3 %v1038_v61 }
 0x1f9   :  { %v400_v7 = vpop.permute.xlu1 %399 }
 0x201   :  { %v402_v19 = vpop.permute.xlu1 %401 }
 0x24e   :  { %v349_v33 = vpop.f32.mrf.mxu2 }
 0x24f   :  { %v361_v35 = vmul.f32 %v349_v33, %v349_v33 }
 0x256   :  { %v351_v34 = vpop.f32.mrf.mxu2 }
 0x257   :  { %v354_v36 = vadd.f32 %v351_v34, %v349_v33  ;;  %v362_v37 = vmul.f32 %v351_v34, %v351_v34 }
 0x259   :  { %v355_v39 = vrot.slane %v354_v36, 4  ;;  %v363_v40 = vadd.f32 %v362_v37, %v361_v35 }
 0x25b   :  { %v356_v41 = vadd.f32 %v355_v39, %v354_v36  ;;  %v364_v42 = vrot.slane %v363_v40, 4 }
 0x25d   :  { %v357_v43 = vrot.slane %v356_v41, 2  ;;  %v365_v44 = vadd.f32 %v364_v42, %v363_v40 }
 0x25f   :  { %v358_v45 = vadd.f32 %v357_v43, %v356_v41  ;;  %v366_v46 = vrot.slane %v365_v44, 2 }
 0x261   :  { %v359_v48 = vrot.slane %v358_v45, 1  ;;  %v367_v49 = vadd.f32 %v366_v46, %v365_v44 }
 0x263   :  { %v360_v50 = vadd.f32 %v359_v48, %v358_v45  ;;  %v368_v51 = vrot.slane %v367_v49, 1 }
 0x265   :  { %v369_v53 = vadd.f32 %v368_v51, %v367_v49  ;;  %v370_v54 = vmul.f32 0.0625, %v360_v50  ;;  %v1046_v51 = vld [vmem:[#allocation2 + $0x98] sm:$0xff] }
 0x266   :  { %569 = vmatpush.bf16.msrb.mxu0 %v1046_v51 }
 0x267   :  { %v371_v55 = vmul.f32 0.0625, %v369_v53  ;;  %v372_v56 = vmul.f32 %v370_v54, %v370_v54  ;;  %v1045_v53 = vld [vmem:[#allocation2 + $0x90] sm:$0xff] }
 0x269   :  { %v373_v58 = vsub.f32 %v371_v55, %v372_v56 }
 0x26a   :  { %570 = vmatpush.bf16.msrb.mxu0 %v1045_v53 }
 0x26b   :  { %v374_v59 = vadd.f32 1e-05, %v373_v58 }
 0x26d   :  { %1069 = vrsqrt.f32 %v374_v59  ;;  %vm381_vm12 = vweird.f32 %v374_v59 }
 0x273   :  { %v1070_v62 = vpop.eup %1069 }
 0x274   :  { %v376_v63 = vmul.f32 %v1070_v62, %v374_v59  ;;  %vm382_vm11 = vweird.f32 %v1070_v62  ;;  %v1164_v59 = vld [vmem:[%s1189_s1 + $0x10] sm:$0xff] }
 0x275   :  { %vm383_vm13 = vmor %vm381_vm12, %vm382_vm11  ;;  %vm752_vm11 = vcmask 261120  }
 0x276   :  { %v377_v0 = vmul.f32 %v1070_v62, %v376_v63 }
 0x278   :  { %v378_v1 = vmul.f32 0.5, %v377_v0 }
 0x27a   :  { %v379_v2 = vsub.f32 1.5, %v378_v1 }
 0x27c   :  { %v380_v3 = vmul.f32 %v1070_v62, %v379_v2 }
 0x27e   :  { %v384_v4 = vsel %vm383_vm13, %v1070_v62, %v380_v3 }
 0x27f   :  { %v385_v5 = vmul.f32 %v384_v4, %v1154_v12 }
 0x281   :  { %v386_v6 = vmul.f32 %v385_v5, %v370_v54  ;;  %v391_v9 = vperm.slane %v385_v5, 2 }
 0x283   :  { %v388_v8 = vrot.slane %v386_v6, 7  ;;  %v392_v11 = vmul.f32 %v391_v9, %v349_v33  ;;  %v393_v13 = vmul.f32 %v391_v9, %v351_v34 }
 0x285   :  { %v390_v10 = vsub.f32 %v1154_v12, %v388_v8 }
 0x287   :  { %v394_v14 = vperm.slane %v390_v10, 3 }
 0x289   :  { %v396_v15 = vadd.f32 %v394_v14, %v393_v13  ;;  %v395_v16 = vadd.f32 %v394_v14, %v392_v11 }
 0x28b   :  { %v398_v17 = vmax.f32 %v396_v15, 0.0  ;;  %v397_v18 = vmax.f32 %v395_v16, 0.0 }
 0x28d   :  { %v403_v20 = vadd.f32 %v400_v7, %v397_v18  ;;  %v404_v21 = vadd.f32 %v402_v19, %v398_v17 }
 0x28f   :  { %v405_v22 = vpack.c.bf16 %v403_v20, %v403_v20  ;;  %v406_v23 = vpack.c.bf16 %v404_v21, %v404_v21 }
 0x291   :  { %v409_v24 = vunpack.c.l.b16 %v405_v22  ;;  %v410_v25 = vunpack.c.l.b16 %v406_v23 }
 0x293   :  { %v411_v26 = vpack.c.b16 %v410_v25, %v409_v24 }
 0x295   :  { %973 = vmatmul.msk.bf16.vlgmr.msra.gmra.mxu3 %vm454_vm14, %v411_v26 }
 0x318   :  { %v467_v27 = vpop.f32.mrf.mxu3 }
 0x319   :  { %v472_v28 = vmax.f32 %v467_v27, 0.0 }
 0x31b   :  { %622 = vrot.lane.b32.xlu2 %v472_v28, %s1109_s26  ;;  %v496_v31 = vmul.f32 %v472_v28, %v472_v28 }
 0x320   :  { %v469_v12 = vpop.f32.mrf.mxu3 }
 0x321   :  { %v473_v30 = vmax.f32 %v469_v12, 0.0 }
 0x323   :  { %v489_v32 = vadd.f32 %v473_v30, %v472_v28  ;;  %v497_v33 = vmul.f32 %v473_v30, %v473_v30  ;;  %624 = vrot.lane.b32.xlu2 %v473_v30, %s1109_s26 }
 0x325   :  { %v490_v34 = vrot.slane %v489_v32, 4  ;;  %v498_v35 = vadd.f32 %v497_v33, %v496_v31  ;;  %v1051_v33 = vld [vmem:[#allocation2 + $0xc0] sm:$0xff] }
 0x326   :  { %667 = vmatpush.bf16.msra.mxu0 %v1051_v33  ;;  %v1052_v33 = vld [vmem:[#allocation2 + $0xc8] sm:$0xff] }
 0x327   :  { %v491_v36 = vadd.f32 %v490_v34, %v489_v32  ;;  %v499_v37 = vrot.slane %v498_v35, 4 }
 0x329   :  { %v492_v38 = vrot.slane %v491_v36, 2  ;;  %v500_v39 = vadd.f32 %v499_v37, %v498_v35 }
 0x32b   :  { %v493_v40 = vadd.f32 %v492_v38, %v491_v36  ;;  %v501_v41 = vrot.slane %v500_v39, 2  ;;  %v1050_v38 = vld [vmem:[#allocation2 + $0xb8] sm:$0xff] }
 0x32c   :  { %668 = vmatpush.bf16.msra.mxu0 %v1050_v38 }
 0x32d   :  { %v494_v42 = vrot.slane %v493_v40, 1  ;;  %v502_v29 = vadd.f32 %v501_v41, %v500_v39  ;;  %v1049_v41 = vld [vmem:[#allocation2 + $0xb0] sm:$0xff] }
 0x32f   :  { %v495_v43 = vadd.f32 %v494_v42, %v493_v40  ;;  %v503_v44 = vrot.slane %v502_v29, 1  ;;  %v1048_v42 = vld [vmem:[#allocation2 + $0xa8] sm:$0xff] }
 0x330   :  { %669 = vmatpush.bf16.msra.mxu0 %v1049_v41 }
 0x331   :  { %v504_v45 = vadd.f32 %v503_v44, %v502_v29  ;;  %v505_v46 = vmul.f32 0.0625, %v495_v43 }
 0x333   :  { %v506_v48 = vmul.f32 0.0625, %v504_v45  ;;  %v507_v49 = vmul.f32 %v505_v46, %v505_v46 }
 0x334   :  { %670 = vmatpush.bf16.msra.mxu0 %v1048_v42 }
 0x335   :  { %v508_v50 = vsub.f32 %v506_v48, %v507_v49 }
 0x337   :  { %v509_v52 = vadd.f32 1e-05, %v508_v50 }
 0x339   :  { %1071 = vrsqrt.f32 %v509_v52  ;;  %vm516_vm0 = vweird.f32 %v509_v52 }
 0x33f   :  { %v1072_v54 = vpop.eup %1071 }
 0x340   :  { %v511_v55 = vmul.f32 %v1072_v54, %v509_v52  ;;  %vm517_vm15 = vweird.f32 %v1072_v54 }
 0x341   :  { %vm518_vm1 = vmor %vm516_vm0, %vm517_vm15 }
 0x342   :  { %v512_v56 = vmul.f32 %v1072_v54, %v511_v55 }
 0x344   :  { %v513_v57 = vmul.f32 0.5, %v512_v56 }
 0x346   :  { %v514_v58 = vsub.f32 1.5, %v513_v57 }
 0x348   :  { %v515_v60 = vmul.f32 %v1072_v54, %v514_v58 }
 0x34a   :  { %v519_v61 = vsel %vm518_vm1, %v1072_v54, %v515_v60 }
 0x34b   :  { %v520_v62 = vmul.f32 %v519_v61, %v1164_v59 }
 0x34d   :  { %v521_v63 = vmul.f32 %v520_v62, %v505_v46  ;;  %v526_v1 = vperm.slane %v520_v62, 0 }
 0x34f   :  { %v523_v0 = vrot.slane %v521_v63, 7  ;;  %v527_v3 = vmul.f32 %v526_v1, %v472_v28  ;;  %v528_v4 = vmul.f32 %v526_v1, %v473_v30 }
 0x351   :  { %v525_v2 = vsub.f32 %v1164_v59, %v523_v0 }
 0x353   :  { %v529_v5 = vperm.slane %v525_v2, 1 }
 0x355   :  { %v531_v6 = vadd.f32 %v529_v5, %v528_v4  ;;  %v530_v7 = vadd.f32 %v529_v5, %v527_v3 }
 0x357   :  { %v532_v8 = vmax.f32 %v530_v7, 0.0  ;;  %v533_v9 = vmax.f32 %v531_v6, 0.0 }
 0x359   :  { %v534_v10 = vpack.c.bf16 %v532_v8, %v532_v8  ;;  %v535_v11 = vpack.c.bf16 %v533_v9, %v533_v9 }
 0x35b   :  { %v538_v13 = vunpack.c.l.b16 %v534_v10  ;;  %v539_v14 = vunpack.c.l.b16 %v535_v11 }
 0x35d   :  { %v540_v15 = vpack.c.b16 %v539_v14, %v538_v13 }
 0x35f   :  { %986 = vmatmul.msk.bf16.vlgmr.msrb.gmra.mxu0 %vm559_vm2, %v540_v15 }
 0x375   :  { %v623_v51 = vpop.permute.xlu2 %622 }
 0x37d   :  { %v625_v63 = vpop.permute.xlu2 %624 }
 0x3dc   :  { %v572_v16 = vpop.f32.mrf.mxu0 }
 0x3dd   :  { %v584_v18 = vmul.f32 %v572_v16, %v572_v16 }
 0x3e4   :  { %v574_v17 = vpop.f32.mrf.mxu0 }
 0x3e5   :  { %v577_v19 = vadd.f32 %v574_v17, %v572_v16  ;;  %v585_v20 = vmul.f32 %v574_v17, %v574_v17 }
 0x3e7   :  { %v578_v21 = vrot.slane %v577_v19, 4  ;;  %v586_v22 = vadd.f32 %v585_v20, %v584_v18 }
 0x3e9   :  { %v579_v23 = vadd.f32 %v578_v21, %v577_v19  ;;  %v587_v24 = vrot.slane %v586_v22, 4 }
 0x3eb   :  { %v580_v25 = vrot.slane %v579_v23, 2  ;;  %v588_v26 = vadd.f32 %v587_v24, %v586_v22 }
 0x3ed   :  { %v581_v27 = vadd.f32 %v580_v25, %v579_v23  ;;  %v589_v28 = vrot.slane %v588_v26, 2 }
 0x3ef   :  { %v582_v12 = vrot.slane %v581_v27, 1  ;;  %v590_v30 = vadd.f32 %v589_v28, %v588_v26 }
 0x3f1   :  { %v583_v31 = vadd.f32 %v582_v12, %v581_v27  ;;  %v591_v32 = vrot.slane %v590_v30, 1 }
 0x3f3   :  { %v592_v34 = vadd.f32 %v591_v32, %v590_v30  ;;  %v593_v35 = vmul.f32 0.0625, %v583_v31  ;;  %v1053_v31 = vld [vmem:[#allocation2 + $0xd0] sm:$0xff] }
 0x3f4   :  { %762 = vmatpush.bf16.msrb.mxu1 %v1053_v31 }
 0x3f5   :  { %v594_v36 = vmul.f32 0.0625, %v592_v34  ;;  %v595_v37 = vmul.f32 %v593_v35, %v593_v35 }
 0x3f7   :  { %v596_v39 = vsub.f32 %v594_v36, %v595_v37 }
 0x3f8   :  { %763 = vmatpush.bf16.msrb.mxu1 %v1052_v33 }
 0x3f9   :  { %v597_v40 = vadd.f32 1e-05, %v596_v39  ;;  %v1173_v39 = vld [vmem:[%s1189_s1 + $0x18] sm:$0xff] }
 0x3fb   :  { %1073 = vrsqrt.f32 %v597_v40  ;;  %vm604_vm5 = vweird.f32 %v597_v40 }
 0x401   :  { %v1074_v29 = vpop.eup %1073 }
 0x402   :  { %v599_v43 = vmul.f32 %v1074_v29, %v597_v40  ;;  %vm605_vm4 = vweird.f32 %v1074_v29 }
 0x403   :  { %vm606_vm6 = vmor %vm604_vm5, %vm605_vm4 }
 0x404   :  { %v600_v44 = vmul.f32 %v1074_v29, %v599_v43 }
 0x406   :  { %v601_v45 = vmul.f32 0.5, %v600_v44 }
 0x408   :  { %v602_v46 = vsub.f32 1.5, %v601_v45 }
 0x40a   :  { %v603_v47 = vmul.f32 %v1074_v29, %v602_v46 }
 0x40c   :  { %v607_v48 = vsel %vm606_vm6, %v1074_v29, %v603_v47 }
 0x40d   :  { %v608_v49 = vmul.f32 %v607_v48, %v1164_v59 }
 0x40f   :  { %v609_v50 = vmul.f32 %v608_v49, %v593_v35  ;;  %v614_v53 = vperm.slane %v608_v49, 2 }
 0x411   :  { %v611_v52 = vrot.slane %v609_v50, 7  ;;  %v615_v55 = vmul.f32 %v614_v53, %v572_v16  ;;  %v616_v56 = vmul.f32 %v614_v53, %v574_v17 }
 0x413   :  { %v613_v54 = vsub.f32 %v1164_v59, %v611_v52 }
 0x415   :  { %v617_v57 = vperm.slane %v613_v54, 3 }
 0x417   :  { %v618_v58 = vadd.f32 %v617_v57, %v615_v55  ;;  %v619_v60 = vadd.f32 %v617_v57, %v616_v56 }
 0x419   :  { %v620_v61 = vmax.f32 %v618_v58, 0.0  ;;  %v621_v62 = vmax.f32 %v619_v60, 0.0 }
 0x41b   :  { %v626_v0 = vadd.f32 %v623_v51, %v620_v61  ;;  %v627_v1 = vadd.f32 %v625_v63, %v621_v62 }
 0x41d   :  { %v628_v2 = vpack.c.bf16 %v626_v0, %v626_v0  ;;  %v629_v3 = vpack.c.bf16 %v627_v1, %v627_v1 }
 0x41f   :  { %v632_v4 = vunpack.c.l.b16 %v628_v2  ;;  %v633_v5 = vunpack.c.l.b16 %v629_v3 }
 0x421   :  { %v634_v6 = vpack.c.b16 %v633_v5, %v632_v4 }
 0x423   :  { %1003 = vmatmul.msk.bf16.vlgmr.msra.gmra.mxu0 %vm659_vm7, %v634_v6 }
 0x4a0   :  { %v672_v7 = vpop.f32.mrf.mxu0 }
 0x4a1   :  { %v677_v8 = vmax.f32 %v672_v7, 0.0 }
 0x4a3   :  { %815 = vrot.lane.b32.xlu0 %v677_v8, %s1110_s29  ;;  %v695_v10 = vmul.f32 %v677_v8, %v677_v8 }
 0x4a8   :  { %v674_v59 = vpop.f32.mrf.mxu0 }
 0x4a9   :  { %v678_v9 = vmax.f32 %v674_v59, 0.0 }
 0x4ab   :  { %v688_v11 = vadd.f32 %v678_v9, %v677_v8  ;;  %v696_v13 = vmul.f32 %v678_v9, %v678_v9  ;;  %817 = vrot.lane.b32.xlu1 %v678_v9, %s1110_s29 }
 0x4ad   :  { %v689_v14 = vrot.slane %v688_v11, 4  ;;  %v697_v15 = vadd.f32 %v696_v13, %v695_v10 }
 0x4af   :  { %v690_v16 = vadd.f32 %v689_v14, %v688_v11  ;;  %v698_v17 = vrot.slane %v697_v15, 4 }
 0x4b1   :  { %v691_v18 = vrot.slane %v690_v16, 2  ;;  %v699_v19 = vadd.f32 %v698_v17, %v697_v15 }
 0x4b3   :  { %v692_v20 = vadd.f32 %v691_v18, %v690_v16  ;;  %v700_v21 = vrot.slane %v699_v19, 2  ;;  %v1055_v18 = vld [vmem:[#allocation2 + $0xe0] sm:$0xff] }
 0x4b4   :  { %849 = vmatpush.bf16.msrb.mxu2 %v1055_v18 }
 0x4b5   :  { %v693_v22 = vrot.slane %v692_v20, 1  ;;  %v701_v23 = vadd.f32 %v700_v21, %v699_v19  ;;  %v1054_v19 = vld [vmem:[#allocation2 + $0xd8] sm:$0xff] }
 0x4b7   :  { %v694_v24 = vadd.f32 %v693_v22, %v692_v20  ;;  %v702_v25 = vrot.slane %v701_v23, 1 }
 0x4b8   :  { %850 = vmatpush.bf16.msrb.mxu2 %v1054_v19 }
 0x4b9   :  { %v703_v26 = vadd.f32 %v702_v25, %v701_v23  ;;  %v704_v27 = vmul.f32 0.0625, %v694_v24 }
 0x4bb   :  { %v705_v28 = vmul.f32 0.0625, %v703_v26  ;;  %v706_v12 = vmul.f32 %v704_v27, %v704_v27 }
 0x4bd   :  { %v707_v30 = vsub.f32 %v705_v28, %v706_v12 }
 0x4bf   :  { %v708_v32 = vadd.f32 1e-05, %v707_v30 }
 0x4c1   :  { %1075 = vrsqrt.f32 %v708_v32  ;;  %vm715_vm9 = vweird.f32 %v708_v32 }
 0x4c7   :  { %v1076_v34 = vpop.eup %1075 }
 0x4c8   :  { %v710_v35 = vmul.f32 %v1076_v34, %v708_v32  ;;  %vm716_vm8 = vweird.f32 %v1076_v34 }
 0x4c9   :  { %vm717_vm10 = vmor %vm715_vm9, %vm716_vm8 }
 0x4ca   :  { %v711_v36 = vmul.f32 %v1076_v34, %v710_v35 }
 0x4cc   :  { %v712_v37 = vmul.f32 0.5, %v711_v36 }
 0x4ce   :  { %v713_v38 = vsub.f32 1.5, %v712_v37 }
 0x4d0   :  { %v714_v40 = vmul.f32 %v1076_v34, %v713_v38 }
 0x4d2   :  { %v718_v41 = vsel %vm717_vm10, %v1076_v34, %v714_v40 }
 0x4d3   :  { %v719_v42 = vmul.f32 %v718_v41, %v1173_v39 }
 0x4d5   :  { %v720_v29 = vmul.f32 %v719_v42, %v704_v27  ;;  %v725_v44 = vperm.slane %v719_v42, 0 }
 0x4d7   :  { %v722_v43 = vrot.slane %v720_v29, 7  ;;  %v726_v46 = vmul.f32 %v725_v44, %v677_v8  ;;  %v727_v47 = vmul.f32 %v725_v44, %v678_v9 }
 0x4d9   :  { %v724_v45 = vsub.f32 %v1173_v39, %v722_v43 }
 0x4db   :  { %v728_v48 = vperm.slane %v724_v45, 1 }
 0x4dd   :  { %v730_v49 = vadd.f32 %v728_v48, %v727_v47  ;;  %v729_v50 = vadd.f32 %v728_v48, %v726_v46  ;;  %v1056_v48 = vld [vmem:[#allocation2 + $0xe8] sm:$0xff] }
 0x4de   :  { %884 = vmatpush.bf16.msrb.mxu3 %v1056_v48 }
 0x4df   :  { %v732_v51 = vmax.f32 %v730_v49, 0.0  ;;  %v731_v52 = vmax.f32 %v729_v50, 0.0 }
 0x4e1   :  { %v733_v53 = vpack.c.bf16 %v731_v52, %v731_v52  ;;  %v734_v54 = vpack.c.bf16 %v732_v51, %v732_v51 }
 0x4e3   :  { %v737_v55 = vunpack.c.l.b16 %v733_v53  ;;  %v738_v56 = vunpack.c.l.b16 %v734_v54 }
 0x4e5   :  { %v739_v57 = vpack.c.b16 %v738_v56, %v737_v55 }
 0x4e7   :  { %1012 = vmatmul.msk.bf16.vlgmr.msrb.gmra.mxu1 %vm752_vm11, %v739_v57 }
 0x515   :  { %v816_v40 = vpop.permute.xlu0 %815 }
 0x51d   :  { %v818_v41 = vpop.permute.xlu1 %817 }
 0x564   :  { %v765_v58 = vpop.f32.mrf.mxu1 }
 0x565   :  { %v777_v61 = vmul.f32 %v765_v58, %v765_v58 }
 0x56c   :  { %v767_v60 = vpop.f32.mrf.mxu1 }
 0x56d   :  { %v770_v62 = vadd.f32 %v767_v60, %v765_v58  ;;  %v778_v63 = vmul.f32 %v767_v60, %v767_v60 }
 0x56f   :  { %v771_v0 = vrot.slane %v770_v62, 4  ;;  %v779_v1 = vadd.f32 %v778_v63, %v777_v61 }
 0x571   :  { %v772_v2 = vadd.f32 %v771_v0, %v770_v62  ;;  %v780_v3 = vrot.slane %v779_v1, 4 }
 0x573   :  { %v773_v4 = vrot.slane %v772_v2, 2  ;;  %v781_v5 = vadd.f32 %v780_v3, %v779_v1 }
 0x575   :  { %v774_v6 = vadd.f32 %v773_v4, %v772_v2  ;;  %v782_v7 = vrot.slane %v781_v5, 2 }
 0x577   :  { %v775_v8 = vrot.slane %v774_v6, 1  ;;  %v783_v59 = vadd.f32 %v782_v7, %v781_v5 }
 0x579   :  { %v776_v9 = vadd.f32 %v775_v8, %v774_v6  ;;  %v784_v10 = vrot.slane %v783_v59, 1 }
 0x57b   :  { %v785_v11 = vadd.f32 %v784_v10, %v783_v59  ;;  %v786_v13 = vmul.f32 0.0625, %v776_v9 }
 0x57d   :  { %v787_v14 = vmul.f32 0.0625, %v785_v11  ;;  %v788_v15 = vmul.f32 %v786_v13, %v786_v13 }
 0x57f   :  { %v789_v16 = vsub.f32 %v787_v14, %v788_v15 }
 0x581   :  { %v790_v17 = vadd.f32 1e-05, %v789_v16 }
 0x583   :  { %1077 = vrsqrt.f32 %v790_v17  ;;  %vm797_vm13 = vweird.f32 %v790_v17 }
 0x589   :  { %v1078_v20 = vpop.eup %1077 }
 0x58a   :  { %v792_v21 = vmul.f32 %v1078_v20, %v790_v17  ;;  %vm798_vm12 = vweird.f32 %v1078_v20 }
 0x58b   :  { %vm799_vm14 = vmor %vm797_vm13, %vm798_vm12 }
 0x58c   :  { %v793_v22 = vmul.f32 %v1078_v20, %v792_v21 }
 0x58e   :  { %v794_v23 = vmul.f32 0.5, %v793_v22 }
 0x590   :  { %v795_v24 = vsub.f32 1.5, %v794_v23 }
 0x592   :  { %v796_v25 = vmul.f32 %v1078_v20, %v795_v24 }
 0x594   :  { %v800_v26 = vsel %vm799_vm14, %v1078_v20, %v796_v25 }
 0x595   :  { %v801_v27 = vmul.f32 %v800_v26, %v1173_v39 }
 0x597   :  { %v802_v28 = vmul.f32 %v801_v27, %v786_v13  ;;  %v807_v30 = vperm.slane %v801_v27, 2 }
 0x599   :  { %v804_v12 = vrot.slane %v802_v28, 7  ;;  %v808_v32 = vmul.f32 %v807_v30, %v765_v58  ;;  %v809_v33 = vmul.f32 %v807_v30, %v767_v60 }
 0x59b   :  { %v806_v31 = vsub.f32 %v1173_v39, %v804_v12 }
 0x59d   :  { %v810_v34 = vperm.slane %v806_v31, 3 }
 0x59f   :  { %v811_v35 = vadd.f32 %v810_v34, %v808_v32  ;;  %v812_v36 = vadd.f32 %v810_v34, %v809_v33 }
 0x5a1   :  { %v813_v37 = vmax.f32 %v811_v35, 0.0  ;;  %v814_v38 = vmax.f32 %v812_v36, 0.0 }
 0x5a3   :  { %v819_v42 = vadd.f32 %v816_v40, %v813_v37  ;;  %v820_v29 = vadd.f32 %v818_v41, %v814_v38 }
 0x5a5   :  { %v822_v43 = vpack.c.bf16 %v820_v29, %v820_v29  ;;  %v821_v44 = vpack.c.bf16 %v819_v42, %v819_v42 }
 0x5a7   :  { %v826_v45 = vunpack.c.l.b16 %v822_v43  ;;  %v825_v46 = vunpack.c.l.b16 %v821_v44 }
 0x5a9   :  { %v827_v47 = vpack.c.b16 %v826_v45, %v825_v46 }
 0x5ab   :  { %1021 = vmatmul.msk.bf16.vlgmr.msrb.gmra.mxu2 %vm752_vm11, %v827_v47 }
 0x62e   :  { %v852_v39 = vpop.f32.mrf.mxu2 }
 0x62f   :  { %v857_v49 = vmax.f32 %v852_v39, 0.0 }
 0x631   :  { %v861_v51 = vpack.c.bf16 %v857_v49, %v857_v49 }
 0x633   :  { %v865_v54 = vunpack.c.l.b16 %v861_v51 }
 0x636   :  { %v854_v50 = vpop.f32.mrf.mxu2 }
 0x637   :  { %v858_v52 = vmax.f32 %v854_v50, 0.0 }
 0x639   :  { %v862_v53 = vpack.c.bf16 %v858_v52, %v858_v52 }
 0x63b   :  { %v866_v55 = vunpack.c.l.b16 %v862_v53 }
 0x63d   :  { %v867_v56 = vpack.c.b16 %v866_v55, %v865_v54 }
 0x63f   :  { %1026 = vmatmul.msk.bf16.vlgmr.msrb.gmra.mxu3 %vm104_vm3, %v867_v56 }
 0x6c2   :  { %v886_v57 = vpop.f32.mrf.mxu3 }
 0x6c3   :  { %891 = vst [vmem:[%s1191_s3] sm:$0xff] %v886_v57 }
 0x6ca   :  { %v888_v58 = vpop.f32.mrf.mxu3 }
 0x6cb   :  { %892 = vst [vmem:[%s1191_s3 + $0x8] sm:$0xff] %v888_v58 }
 0x6cc   :  { %897 = vsyncpa [#allocation3], 1 }

</bundles_post_ra>
